<compile_context>
chip_gen: v7x
topology: tpu7x:2x2x1
jax: 0.10.0
libtpu: 0.0.40
codegen_flags: <defaults>
</compile_context>

<pallas_src>
import functools

import jax
import jax.numpy as jnp
from jax import lax
from jax.experimental import pallas as pl
from jax.experimental.pallas import tpu as pltpu

KH = KW = 5
STRIDE = 2
PAD = 2


def _round_up(v, m):
    return ((v + m - 1) // m) * m


def _num_row_tiles(oh):
    """2 row tiles on v7x (2 TensorCores/chip), 1 elsewhere (v5e/v6e: 1 TC)."""
    try:
        kind = jax.devices()[0].device_kind.lower()
    except Exception:
        kind = ""
    if "v7" in kind and oh % 2 == 0 and oh >= 4:
        return 2
    return 1


def _dw_conv_kernel(xp_ref, w_ref, o_ref):
    # xp_ref: (HPP, 2, TW, C)  packed input [padded row, col parity, col//2 (+1 pad), chan]
    # w_ref : (KH, KW, C)      depthwise taps, channels last
    # o_ref : (TOH, OW, C)     output row tile
    toh, ow, c = o_ref.shape
    tw = xp_ref.shape[2]
    kh_n, kw_n, _ = w_ref.shape
    assert (kh_n, kw_n) == (KH, KW)

    row0 = 2 * toh * pl.program_id(1)       # first packed row used by this tile

    # Hoist the 25 per-tap weight lane-vectors out of the row loop; JAX does
    # not CSE the extract/broadcast, so doing it per row would cost ~25x more.
    wv = w_ref[...]
    wtap = [[wv[a, b].reshape(1, c) for b in range(KW)] for a in range(KH)]

    def out_row(i, carry):
        base = row0 + 2 * i
        # Tap row 0 initializes the accumulators (avoids zero-init + add-to-zero).
        xe = xp_ref[base, 0, :, :]           # even original columns (aligned, contiguous)
        xo = xp_ref[base, 1, :, :]           # odd  original columns
        acc0 = xe * wtap[0][0] + xo * wtap[0][1]   # taps landing at packed col ox
        acc1 = xe * wtap[0][2] + xo * wtap[0][3]   # taps landing at packed col ox+1
        acc2 = xe * wtap[0][4]                     # taps landing at packed col ox+2
        for a in range(1, KH):               # remaining 4 tap rows, unrolled
            xe = xp_ref[base + a, 0, :, :]
            xo = xp_ref[base + a, 1, :, :]
            acc0 = acc0 + xe * wtap[a][0] + xo * wtap[a][1]
            acc1 = acc1 + xe * wtap[a][2] + xo * wtap[a][3]
            acc2 = acc2 + xe * wtap[a][4]
        # out[ox] = acc0[ox] + acc1[ox+1] + acc2[ox+2]; the +1/+2 shifts are
        # sublane rotations on the XLU (positive shift == negative mod tw), so
        # the VALU-bound tap loop has no misaligned sublane slices.
        row = acc0 + pltpu.roll(acc1, tw - 1, 0) + pltpu.roll(acc2, tw - 2, 0)
        o_ref[i] = row[0:ow].astype(o_ref.dtype)
        return carry

    lax.fori_loop(0, toh, out_row, 0)


@functools.partial(jax.jit, static_argnames=("n_row_tiles",))
def _depthwise_conv_impl(x_nchw, w_oihw, *, n_row_tiles):
    n, c, h, w = x_nchw.shape
    oh = (h + 2 * PAD - KH) // STRIDE + 1
    ow = (w + 2 * PAD - KW) // STRIDE + 1
    assert oh % n_row_tiles == 0

    # Make W even so the column-parity split is a pure reshape (extra column is
    # part of the conv's zero padding, so correctness is unchanged).
    if w % 2:
        x_nchw = jnp.pad(x_nchw, ((0, 0), (0, 0), (0, 0), (0, 1)))
        w = w + 1
    we = w // 2

    hpp = 2 * (oh - 1) + KH                  # packed rows actually touched
    tw = _round_up(ow + 2, 8)                # sublane-aligned packed width

    # One fused XLA layout op: NCHW -> (N, HPP, 2, TW, C) with zero padding
    # baked in:  packed[n, p, t, s, c] = x[n, c, p-PAD, 2*(s-1)+t]  (else 0).
    x5 = x_nchw.reshape(n, c, h, we, 2)
    x5 = jnp.transpose(x5, (0, 2, 4, 3, 1))                              # (N, H, 2, We, C)
    xp = jnp.pad(x5, ((0, 0), (PAD, hpp - h - PAD), (0, 0),
                      (1, tw - 1 - we), (0, 0)))                         # (N, HPP, 2, TW, C)

    w_hwc = jnp.transpose(w_oihw[:, 0, :, :], (1, 2, 0))                 # (KH, KW, C)

    toh = oh // n_row_tiles
    flops = 2 * n * oh * ow * c * KH * KW
    bytes_accessed = 4 * (int(xp.size) + int(w_hwc.size) + n * oh * ow * c)

    out_nhwc = pl.pallas_call(
        _dw_conv_kernel,
        out_shape=jax.ShapeDtypeStruct((n, oh, ow, c), x_nchw.dtype),
        grid=(n, n_row_tiles),
        in_specs=[
            # Full packed image per batch; index map ignores the row-tile axis
            # so it is DMA'd once per batch and stays resident in VMEM.
            pl.BlockSpec((None, hpp, 2, tw, c), lambda nb, rb: (nb, 0, 0, 0, 0)),
            pl.BlockSpec((KH, KW, c), lambda nb, rb: (0, 0, 0)),
        ],
        out_specs=pl.BlockSpec((None, toh, ow, c), lambda nb, rb: (nb, rb, 0, 0)),
        compiler_params=pltpu.CompilerParams(
            dimension_semantics=("parallel", "parallel"),
            vmem_limit_bytes=32 * 1024 * 1024,
        ),
        cost_estimate=pl.CostEstimate(
            flops=flops, transcendentals=0, bytes_accessed=bytes_accessed),
    )(xp, w_hwc)

    # Kept only to match the module's NCHW output contract.
    return jnp.transpose(out_nhwc, (0, 3, 1, 2))


def depthwise_conv5x5_s2(x_nchw, w_oihw):
    """Matches torch Conv2d(72, 72, (5,5), stride=2, padding=2, groups=72, bias=False)."""
    _, _, h, _ = x_nchw.shape
    oh = (h + 2 * PAD - KH) // STRIDE + 1
    return _depthwise_conv_impl(x_nchw, w_oihw, n_row_tiles=_num_row_tiles(oh))


if __name__ == "__main__":
    key = jax.random.PRNGKey(0)
    kx, kw_ = jax.random.split(key)

    # Shapes from the module spec: [1, 72, 56, 56] input, 72 depthwise 5x5 taps.
    N, C, H, W = 1, 72, 56, 56
    x29 = jax.random.normal(kx, (N, C, H, W), jnp.float32)
    weight = jax.random.normal(kw_, (C, 1, KH, KW), jnp.float32) * 0.1

    x30 = jax.block_until_ready(depthwise_conv5x5_s2(x29, weight))

    # Reference: XLA grouped convolution (same semantics as the PyTorch module).
    ref = lax.conv_general_dilated(
        x29, weight,
        window_strides=(STRIDE, STRIDE),
        padding=((PAD, PAD), (PAD, PAD)),
        dimension_numbers=("NCHW", "OIHW", "NCHW"),
        feature_group_count=C,
    )
    OH = (H + 2 * PAD - KH) // STRIDE + 1
    OW = (W + 2 * PAD - KW) // STRIDE + 1
    assert x30.shape == ref.shape == (N, C, OH, OW)
    err = float(jnp.max(jnp.abs(x30 - ref)))
    assert err < 1e-3, f"max abs error {err}"

    print("KERNEL_OK")
</pallas_src>

<mosaic_0001>
module attributes {stable_mosaic.version = 11 : i64} {
  func.func @_dw_conv_kernel(%arg0: i32, %arg1: i32, %arg2: memref<1x59x2x32x72xf32, #tpu.memory_space<vmem>>, %arg3: memref<5x5x72xf32, #tpu.memory_space<vmem>>, %arg4: memref<1x28x28x72xf32, #tpu.memory_space<vmem>>) attributes {dimension_semantics = [#tpu.dimension_semantics<parallel>, #tpu.dimension_semantics<parallel>], iteration_bounds = array<i64: 1, 1>, scalar_prefetch = 0 : i64, scratch_operands = 0 : i64, tpu.core_type = #tpu.core_type<tc>, window_params = [{transform_indices = @transform_0, window_bounds = array<i64: 1, 59, 2, 32, 72>}, {pipeline_mode = #tpu.pipeline_mode<synchronous>, transform_indices = @transform_1, window_bounds = array<i64: 5, 5, 72>}, {transform_indices = @transform_2, window_bounds = array<i64: 1, 28, 28, 72>}]} {
    %c56_i32 = arith.constant 56 : i32
    %0 = arith.muli %c56_i32, %arg1 : i32
    %c0 = arith.constant 0 : index
    %c0_0 = arith.constant 0 : index
    %c0_1 = arith.constant 0 : index
    %1 = vector.load %arg3[%c0, %c0_0, %c0_1] : memref<5x5x72xf32, #tpu.memory_space<vmem>>, vector<5x5x72xf32>
    %2 = vector.extract_strided_slice %1 {offsets = [0, 0, 0], sizes = [1, 1, 72], strides = [1, 1, 1]} : vector<5x5x72xf32> to vector<1x1x72xf32>
    %3 = vector.shape_cast %2 : vector<1x1x72xf32> to vector<72xf32>
    %4 = vector.shape_cast %3 : vector<72xf32> to vector<1x72xf32>
    %5 = vector.extract_strided_slice %1 {offsets = [0, 1, 0], sizes = [1, 1, 72], strides = [1, 1, 1]} : vector<5x5x72xf32> to vector<1x1x72xf32>
    %6 = vector.shape_cast %5 : vector<1x1x72xf32> to vector<72xf32>
    %7 = vector.shape_cast %6 : vector<72xf32> to vector<1x72xf32>
    %8 = vector.extract_strided_slice %1 {offsets = [0, 2, 0], sizes = [1, 1, 72], strides = [1, 1, 1]} : vector<5x5x72xf32> to vector<1x1x72xf32>
    %9 = vector.shape_cast %8 : vector<1x1x72xf32> to vector<72xf32>
    %10 = vector.shape_cast %9 : vector<72xf32> to vector<1x72xf32>
    %11 = vector.extract_strided_slice %1 {offsets = [0, 3, 0], sizes = [1, 1, 72], strides = [1, 1, 1]} : vector<5x5x72xf32> to vector<1x1x72xf32>
    %12 = vector.shape_cast %11 : vector<1x1x72xf32> to vector<72xf32>
    %13 = vector.shape_cast %12 : vector<72xf32> to vector<1x72xf32>
    %14 = vector.extract_strided_slice %1 {offsets = [0, 4, 0], sizes = [1, 1, 72], strides = [1, 1, 1]} : vector<5x5x72xf32> to vector<1x1x72xf32>
    %15 = vector.shape_cast %14 : vector<1x1x72xf32> to vector<72xf32>
    %16 = vector.shape_cast %15 : vector<72xf32> to vector<1x72xf32>
    %17 = vector.extract_strided_slice %1 {offsets = [1, 0, 0], sizes = [1, 1, 72], strides = [1, 1, 1]} : vector<5x5x72xf32> to vector<1x1x72xf32>
    %18 = vector.shape_cast %17 : vector<1x1x72xf32> to vector<72xf32>
    %19 = vector.shape_cast %18 : vector<72xf32> to vector<1x72xf32>
    %20 = vector.extract_strided_slice %1 {offsets = [1, 1, 0], sizes = [1, 1, 72], strides = [1, 1, 1]} : vector<5x5x72xf32> to vector<1x1x72xf32>
    %21 = vector.shape_cast %20 : vector<1x1x72xf32> to vector<72xf32>
    %22 = vector.shape_cast %21 : vector<72xf32> to vector<1x72xf32>
    %23 = vector.extract_strided_slice %1 {offsets = [1, 2, 0], sizes = [1, 1, 72], strides = [1, 1, 1]} : vector<5x5x72xf32> to vector<1x1x72xf32>
    %24 = vector.shape_cast %23 : vector<1x1x72xf32> to vector<72xf32>
    %25 = vector.shape_cast %24 : vector<72xf32> to vector<1x72xf32>
    %26 = vector.extract_strided_slice %1 {offsets = [1, 3, 0], sizes = [1, 1, 72], strides = [1, 1, 1]} : vector<5x5x72xf32> to vector<1x1x72xf32>
    %27 = vector.shape_cast %26 : vector<1x1x72xf32> to vector<72xf32>
    %28 = vector.shape_cast %27 : vector<72xf32> to vector<1x72xf32>
    %29 = vector.extract_strided_slice %1 {offsets = [1, 4, 0], sizes = [1, 1, 72], strides = [1, 1, 1]} : vector<5x5x72xf32> to vector<1x1x72xf32>
    %30 = vector.shape_cast %29 : vector<1x1x72xf32> to vector<72xf32>
    %31 = vector.shape_cast %30 : vector<72xf32> to vector<1x72xf32>
    %32 = vector.extract_strided_slice %1 {offsets = [2, 0, 0], sizes = [1, 1, 72], strides = [1, 1, 1]} : vector<5x5x72xf32> to vector<1x1x72xf32>
    %33 = vector.shape_cast %32 : vector<1x1x72xf32> to vector<72xf32>
    %34 = vector.shape_cast %33 : vector<72xf32> to vector<1x72xf32>
    %35 = vector.extract_strided_slice %1 {offsets = [2, 1, 0], sizes = [1, 1, 72], strides = [1, 1, 1]} : vector<5x5x72xf32> to vector<1x1x72xf32>
    %36 = vector.shape_cast %35 : vector<1x1x72xf32> to vector<72xf32>
    %37 = vector.shape_cast %36 : vector<72xf32> to vector<1x72xf32>
    %38 = vector.extract_strided_slice %1 {offsets = [2, 2, 0], sizes = [1, 1, 72], strides = [1, 1, 1]} : vector<5x5x72xf32> to vector<1x1x72xf32>
    %39 = vector.shape_cast %38 : vector<1x1x72xf32> to vector<72xf32>
    %40 = vector.shape_cast %39 : vector<72xf32> to vector<1x72xf32>
    %41 = vector.extract_strided_slice %1 {offsets = [2, 3, 0], sizes = [1, 1, 72], strides = [1, 1, 1]} : vector<5x5x72xf32> to vector<1x1x72xf32>
    %42 = vector.shape_cast %41 : vector<1x1x72xf32> to vector<72xf32>
    %43 = vector.shape_cast %42 : vector<72xf32> to vector<1x72xf32>
    %44 = vector.extract_strided_slice %1 {offsets = [2, 4, 0], sizes = [1, 1, 72], strides = [1, 1, 1]} : vector<5x5x72xf32> to vector<1x1x72xf32>
    %45 = vector.shape_cast %44 : vector<1x1x72xf32> to vector<72xf32>
    %46 = vector.shape_cast %45 : vector<72xf32> to vector<1x72xf32>
    %47 = vector.extract_strided_slice %1 {offsets = [3, 0, 0], sizes = [1, 1, 72], strides = [1, 1, 1]} : vector<5x5x72xf32> to vector<1x1x72xf32>
    %48 = vector.shape_cast %47 : vector<1x1x72xf32> to vector<72xf32>
    %49 = vector.shape_cast %48 : vector<72xf32> to vector<1x72xf32>
    %50 = vector.extract_strided_slice %1 {offsets = [3, 1, 0], sizes = [1, 1, 72], strides = [1, 1, 1]} : vector<5x5x72xf32> to vector<1x1x72xf32>
    %51 = vector.shape_cast %50 : vector<1x1x72xf32> to vector<72xf32>
    %52 = vector.shape_cast %51 : vector<72xf32> to vector<1x72xf32>
    %53 = vector.extract_strided_slice %1 {offsets = [3, 2, 0], sizes = [1, 1, 72], strides = [1, 1, 1]} : vector<5x5x72xf32> to vector<1x1x72xf32>
    %54 = vector.shape_cast %53 : vector<1x1x72xf32> to vector<72xf32>
    %55 = vector.shape_cast %54 : vector<72xf32> to vector<1x72xf32>
    %56 = vector.extract_strided_slice %1 {offsets = [3, 3, 0], sizes = [1, 1, 72], strides = [1, 1, 1]} : vector<5x5x72xf32> to vector<1x1x72xf32>
    %57 = vector.shape_cast %56 : vector<1x1x72xf32> to vector<72xf32>
    %58 = vector.shape_cast %57 : vector<72xf32> to vector<1x72xf32>
    %59 = vector.extract_strided_slice %1 {offsets = [3, 4, 0], sizes = [1, 1, 72], strides = [1, 1, 1]} : vector<5x5x72xf32> to vector<1x1x72xf32>
    %60 = vector.shape_cast %59 : vector<1x1x72xf32> to vector<72xf32>
    %61 = vector.shape_cast %60 : vector<72xf32> to vector<1x72xf32>
    %62 = vector.extract_strided_slice %1 {offsets = [4, 0, 0], sizes = [1, 1, 72], strides = [1, 1, 1]} : vector<5x5x72xf32> to vector<1x1x72xf32>
    %63 = vector.shape_cast %62 : vector<1x1x72xf32> to vector<72xf32>
    %64 = vector.shape_cast %63 : vector<72xf32> to vector<1x72xf32>
    %65 = vector.extract_strided_slice %1 {offsets = [4, 1, 0], sizes = [1, 1, 72], strides = [1, 1, 1]} : vector<5x5x72xf32> to vector<1x1x72xf32>
    %66 = vector.shape_cast %65 : vector<1x1x72xf32> to vector<72xf32>
    %67 = vector.shape_cast %66 : vector<72xf32> to vector<1x72xf32>
    %68 = vector.extract_strided_slice %1 {offsets = [4, 2, 0], sizes = [1, 1, 72], strides = [1, 1, 1]} : vector<5x5x72xf32> to vector<1x1x72xf32>
    %69 = vector.shape_cast %68 : vector<1x1x72xf32> to vector<72xf32>
    %70 = vector.shape_cast %69 : vector<72xf32> to vector<1x72xf32>
    %71 = vector.extract_strided_slice %1 {offsets = [4, 3, 0], sizes = [1, 1, 72], strides = [1, 1, 1]} : vector<5x5x72xf32> to vector<1x1x72xf32>
    %72 = vector.shape_cast %71 : vector<1x1x72xf32> to vector<72xf32>
    %73 = vector.shape_cast %72 : vector<72xf32> to vector<1x72xf32>
    %74 = vector.extract_strided_slice %1 {offsets = [4, 4, 0], sizes = [1, 1, 72], strides = [1, 1, 1]} : vector<5x5x72xf32> to vector<1x1x72xf32>
    %75 = vector.shape_cast %74 : vector<1x1x72xf32> to vector<72xf32>
    %76 = vector.shape_cast %75 : vector<72xf32> to vector<1x72xf32>
    %c0_i32 = arith.constant 0 : i32
    %c28_i32 = arith.constant 28 : i32
    %77 = arith.addi %c0_i32, %c28_i32 : i32
    %c1_i32 = arith.constant 1 : i32
    scf.for %arg5 = %c0_i32 to %77 step %c1_i32  : i32 {
      %c2_i32 = arith.constant 2 : i32
      %78 = arith.muli %c2_i32, %arg5 : i32
      %79 = arith.addi %0, %78 : i32
      %c0_3 = arith.constant 0 : index
      %80 = arith.index_cast %79 : i32 to index
      %c0_4 = arith.constant 0 : index
      %c0_5 = arith.constant 0 : index
      %c0_6 = arith.constant 0 : index
      %81 = vector.load %arg2[%c0_3, %80, %c0_4, %c0_5, %c0_6] : memref<1x59x2x32x72xf32, #tpu.memory_space<vmem>>, vector<1x1x1x32x72xf32>
      %82 = vector.shape_cast %81 : vector<1x1x1x32x72xf32> to vector<32x72xf32>
      %c0_7 = arith.constant 0 : index
      %83 = arith.index_cast %79 : i32 to index
      %c1 = arith.constant 1 : index
      %c0_8 = arith.constant 0 : index
      %c0_9 = arith.constant 0 : index
      %84 = vector.load %arg2[%c0_7, %83, %c1, %c0_8, %c0_9] : memref<1x59x2x32x72xf32, #tpu.memory_space<vmem>>, vector<1x1x1x32x72xf32>
      %85 = vector.shape_cast %84 : vector<1x1x1x32x72xf32> to vector<32x72xf32>
      %86 = vector.broadcast %4 : vector<1x72xf32> to vector<32x72xf32>
      %87 = arith.mulf %82, %86 : vector<32x72xf32>
      %88 = vector.broadcast %7 : vector<1x72xf32> to vector<32x72xf32>
      %89 = arith.mulf %85, %88 : vector<32x72xf32>
      %90 = arith.addf %87, %89 : vector<32x72xf32>
      %91 = vector.broadcast %10 : vector<1x72xf32> to vector<32x72xf32>
      %92 = arith.mulf %82, %91 : vector<32x72xf32>
      %93 = vector.broadcast %13 : vector<1x72xf32> to vector<32x72xf32>
      %94 = arith.mulf %85, %93 : vector<32x72xf32>
      %95 = arith.addf %92, %94 : vector<32x72xf32>
      %96 = vector.broadcast %16 : vector<1x72xf32> to vector<32x72xf32>
      %97 = arith.mulf %82, %96 : vector<32x72xf32>
      %c1_i32_10 = arith.constant 1 : i32
      %98 = arith.addi %79, %c1_i32_10 : i32
      %c0_11 = arith.constant 0 : index
      %99 = arith.index_cast %98 : i32 to index
      %c0_12 = arith.constant 0 : index
      %c0_13 = arith.constant 0 : index
      %c0_14 = arith.constant 0 : index
      %100 = vector.load %arg2[%c0_11, %99, %c0_12, %c0_13, %c0_14] : memref<1x59x2x32x72xf32, #tpu.memory_space<vmem>>, vector<1x1x1x32x72xf32>
      %101 = vector.shape_cast %100 : vector<1x1x1x32x72xf32> to vector<32x72xf32>
      %c1_i32_15 = arith.constant 1 : i32
      %102 = arith.addi %79, %c1_i32_15 : i32
      %c0_16 = arith.constant 0 : index
      %103 = arith.index_cast %102 : i32 to index
      %c1_17 = arith.constant 1 : index
      %c0_18 = arith.constant 0 : index
      %c0_19 = arith.constant 0 : index
      %104 = vector.load %arg2[%c0_16, %103, %c1_17, %c0_18, %c0_19] : memref<1x59x2x32x72xf32, #tpu.memory_space<vmem>>, vector<1x1x1x32x72xf32>
      %105 = vector.shape_cast %104 : vector<1x1x1x32x72xf32> to vector<32x72xf32>
      %106 = vector.broadcast %19 : vector<1x72xf32> to vector<32x72xf32>
      %107 = arith.mulf %101, %106 : vector<32x72xf32>
      %108 = arith.addf %90, %107 : vector<32x72xf32>
      %109 = vector.broadcast %22 : vector<1x72xf32> to vector<32x72xf32>
      %110 = arith.mulf %105, %109 : vector<32x72xf32>
      %111 = arith.addf %108, %110 : vector<32x72xf32>
      %112 = vector.broadcast %25 : vector<1x72xf32> to vector<32x72xf32>
      %113 = arith.mulf %101, %112 : vector<32x72xf32>
      %114 = arith.addf %95, %113 : vector<32x72xf32>
      %115 = vector.broadcast %28 : vector<1x72xf32> to vector<32x72xf32>
      %116 = arith.mulf %105, %115 : vector<32x72xf32>
      %117 = arith.addf %114, %116 : vector<32x72xf32>
      %118 = vector.broadcast %31 : vector<1x72xf32> to vector<32x72xf32>
      %119 = arith.mulf %101, %118 : vector<32x72xf32>
      %120 = arith.addf %97, %119 : vector<32x72xf32>
      %c2_i32_20 = arith.constant 2 : i32
      %121 = arith.addi %79, %c2_i32_20 : i32
      %c0_21 = arith.constant 0 : index
      %122 = arith.index_cast %121 : i32 to index
      %c0_22 = arith.constant 0 : index
      %c0_23 = arith.constant 0 : index
      %c0_24 = arith.constant 0 : index
      %123 = vector.load %arg2[%c0_21, %122, %c0_22, %c0_23, %c0_24] : memref<1x59x2x32x72xf32, #tpu.memory_space<vmem>>, vector<1x1x1x32x72xf32>
      %124 = vector.shape_cast %123 : vector<1x1x1x32x72xf32> to vector<32x72xf32>
      %c2_i32_25 = arith.constant 2 : i32
      %125 = arith.addi %79, %c2_i32_25 : i32
      %c0_26 = arith.constant 0 : index
      %126 = arith.index_cast %125 : i32 to index
      %c1_27 = arith.constant 1 : index
      %c0_28 = arith.constant 0 : index
      %c0_29 = arith.constant 0 : index
      %127 = vector.load %arg2[%c0_26, %126, %c1_27, %c0_28, %c0_29] : memref<1x59x2x32x72xf32, #tpu.memory_space<vmem>>, vector<1x1x1x32x72xf32>
      %128 = vector.shape_cast %127 : vector<1x1x1x32x72xf32> to vector<32x72xf32>
      %129 = vector.broadcast %34 : vector<1x72xf32> to vector<32x72xf32>
      %130 = arith.mulf %124, %129 : vector<32x72xf32>
      %131 = arith.addf %111, %130 : vector<32x72xf32>
      %132 = vector.broadcast %37 : vector<1x72xf32> to vector<32x72xf32>
      %133 = arith.mulf %128, %132 : vector<32x72xf32>
      %134 = arith.addf %131, %133 : vector<32x72xf32>
      %135 = vector.broadcast %40 : vector<1x72xf32> to vector<32x72xf32>
      %136 = arith.mulf %124, %135 : vector<32x72xf32>
      %137 = arith.addf %117, %136 : vector<32x72xf32>
      %138 = vector.broadcast %43 : vector<1x72xf32> to vector<32x72xf32>
      %139 = arith.mulf %128, %138 : vector<32x72xf32>
      %140 = arith.addf %137, %139 : vector<32x72xf32>
      %141 = vector.broadcast %46 : vector<1x72xf32> to vector<32x72xf32>
      %142 = arith.mulf %124, %141 : vector<32x72xf32>
      %143 = arith.addf %120, %142 : vector<32x72xf32>
      %c3_i32 = arith.constant 3 : i32
      %144 = arith.addi %79, %c3_i32 : i32
      %c0_30 = arith.constant 0 : index
      %145 = arith.index_cast %144 : i32 to index
      %c0_31 = arith.constant 0 : index
      %c0_32 = arith.constant 0 : index
      %c0_33 = arith.constant 0 : index
      %146 = vector.load %arg2[%c0_30, %145, %c0_31, %c0_32, %c0_33] : memref<1x59x2x32x72xf32, #tpu.memory_space<vmem>>, vector<1x1x1x32x72xf32>
      %147 = vector.shape_cast %146 : vector<1x1x1x32x72xf32> to vector<32x72xf32>
      %c3_i32_34 = arith.constant 3 : i32
      %148 = arith.addi %79, %c3_i32_34 : i32
      %c0_35 = arith.constant 0 : index
      %149 = arith.index_cast %148 : i32 to index
      %c1_36 = arith.constant 1 : index
      %c0_37 = arith.constant 0 : index
      %c0_38 = arith.constant 0 : index
      %150 = vector.load %arg2[%c0_35, %149, %c1_36, %c0_37, %c0_38] : memref<1x59x2x32x72xf32, #tpu.memory_space<vmem>>, vector<1x1x1x32x72xf32>
      %151 = vector.shape_cast %150 : vector<1x1x1x32x72xf32> to vector<32x72xf32>
      %152 = vector.broadcast %49 : vector<1x72xf32> to vector<32x72xf32>
      %153 = arith.mulf %147, %152 : vector<32x72xf32>
      %154 = arith.addf %134, %153 : vector<32x72xf32>
      %155 = vector.broadcast %52 : vector<1x72xf32> to vector<32x72xf32>
      %156 = arith.mulf %151, %155 : vector<32x72xf32>
      %157 = arith.addf %154, %156 : vector<32x72xf32>
      %158 = vector.broadcast %55 : vector<1x72xf32> to vector<32x72xf32>
      %159 = arith.mulf %147, %158 : vector<32x72xf32>
      %160 = arith.addf %140, %159 : vector<32x72xf32>
      %161 = vector.broadcast %58 : vector<1x72xf32> to vector<32x72xf32>
      %162 = arith.mulf %151, %161 : vector<32x72xf32>
      %163 = arith.addf %160, %162 : vector<32x72xf32>
      %164 = vector.broadcast %61 : vector<1x72xf32> to vector<32x72xf32>
      %165 = arith.mulf %147, %164 : vector<32x72xf32>
      %166 = arith.addf %143, %165 : vector<32x72xf32>
      %c4_i32 = arith.constant 4 : i32
      %167 = arith.addi %79, %c4_i32 : i32
      %c0_39 = arith.constant 0 : index
      %168 = arith.index_cast %167 : i32 to index
      %c0_40 = arith.constant 0 : index
      %c0_41 = arith.constant 0 : index
      %c0_42 = arith.constant 0 : index
      %169 = vector.load %arg2[%c0_39, %168, %c0_40, %c0_41, %c0_42] : memref<1x59x2x32x72xf32, #tpu.memory_space<vmem>>, vector<1x1x1x32x72xf32>
      %170 = vector.shape_cast %169 : vector<1x1x1x32x72xf32> to vector<32x72xf32>
      %c4_i32_43 = arith.constant 4 : i32
      %171 = arith.addi %79, %c4_i32_43 : i32
      %c0_44 = arith.constant 0 : index
      %172 = arith.index_cast %171 : i32 to index
      %c1_45 = arith.constant 1 : index
      %c0_46 = arith.constant 0 : index
      %c0_47 = arith.constant 0 : index
      %173 = vector.load %arg2[%c0_44, %172, %c1_45, %c0_46, %c0_47] : memref<1x59x2x32x72xf32, #tpu.memory_space<vmem>>, vector<1x1x1x32x72xf32>
      %174 = vector.shape_cast %173 : vector<1x1x1x32x72xf32> to vector<32x72xf32>
      %175 = vector.broadcast %64 : vector<1x72xf32> to vector<32x72xf32>
      %176 = arith.mulf %170, %175 : vector<32x72xf32>
      %177 = arith.addf %157, %176 : vector<32x72xf32>
      %178 = vector.broadcast %67 : vector<1x72xf32> to vector<32x72xf32>
      %179 = arith.mulf %174, %178 : vector<32x72xf32>
      %180 = arith.addf %177, %179 : vector<32x72xf32>
      %181 = vector.broadcast %70 : vector<1x72xf32> to vector<32x72xf32>
      %182 = arith.mulf %170, %181 : vector<32x72xf32>
      %183 = arith.addf %163, %182 : vector<32x72xf32>
      %184 = vector.broadcast %73 : vector<1x72xf32> to vector<32x72xf32>
      %185 = arith.mulf %174, %184 : vector<32x72xf32>
      %186 = arith.addf %183, %185 : vector<32x72xf32>
      %187 = vector.broadcast %76 : vector<1x72xf32> to vector<32x72xf32>
      %188 = arith.mulf %170, %187 : vector<32x72xf32>
      %189 = arith.addf %166, %188 : vector<32x72xf32>
      %c31_i32 = arith.constant 31 : i32
      %190 = tpu.dynamic_rotate %186 by %c31_i32 dim 0 : vector<32x72xf32>, i32 -> vector<32x72xf32>
      %191 = arith.addf %180, %190 : vector<32x72xf32>
      %c30_i32 = arith.constant 30 : i32
      %192 = tpu.dynamic_rotate %189 by %c30_i32 dim 0 : vector<32x72xf32>, i32 -> vector<32x72xf32>
      %193 = arith.addf %191, %192 : vector<32x72xf32>
      %194 = vector.extract_strided_slice %193 {offsets = [0, 0], sizes = [28, 72], strides = [1, 1]} : vector<32x72xf32> to vector<28x72xf32>
      %c0_48 = arith.constant 0 : index
      %195 = arith.index_cast %arg5 : i32 to index
      %c0_49 = arith.constant 0 : index
      %c0_50 = arith.constant 0 : index
      %196 = vector.load %arg4[%c0_48, %195, %c0_49, %c0_50] : memref<1x28x28x72xf32, #tpu.memory_space<vmem>>, vector<1x1x28x72xf32>
      %197 = vector.shape_cast %196 : vector<1x1x28x72xf32> to vector<28x72xf32>
      %198 = vector.shape_cast %194 : vector<28x72xf32> to vector<1x1x28x72xf32>
      tpu.vector_store %arg4[%c0_48, %195, %c0_49, %c0_50], %198 {strides = array<i32>} : memref<1x28x28x72xf32, #tpu.memory_space<vmem>>, vector<1x1x28x72xf32>,
    }
    %c28_i32_2 = arith.constant 28 : i32
    return
  }
  func.func @transform_0(%arg0: i32, %arg1: i32) -> (i32, i32, i32, i32, i32) {
    %c0_i32 = arith.constant 0 : i32
    %c0_i32_0 = arith.constant 0 : i32
    %c0_i32_1 = arith.constant 0 : i32
    %c0_i32_2 = arith.constant 0 : i32
    %c0_i32_3 = arith.constant 0 : i32
    return %arg0, %c0_i32, %c0_i32_0, %c0_i32_1, %c0_i32_2 : i32, i32, i32, i32, i32
  }
  func.func @transform_1(%arg0: i32, %arg1: i32) -> (i32, i32, i32) {
    %c0_i32 = arith.constant 0 : i32
    %c0_i32_0 = arith.constant 0 : i32
    %c0_i32_1 = arith.constant 0 : i32
    %c0_i32_2 = arith.constant 0 : i32
    return %c0_i32, %c0_i32_0, %c0_i32_1 : i32, i32, i32
  }
  func.func @transform_2(%arg0: i32, %arg1: i32) -> (i32, i32, i32, i32) {
    %c0_i32 = arith.constant 0 : i32
    %c0_i32_0 = arith.constant 0 : i32
    %c0_i32_1 = arith.constant 0 : i32
    return %arg0, %arg1, %c0_i32, %c0_i32_0 : i32, i32, i32, i32
  }
}

</mosaic_0001>

<bundles_post_ra>
// kernel: _depthwise_conv_impl.1
= control target key start
LH: loop header
LB: loop body
LE: loop exit
PB: predicated region body
PF: predicated region fallthrough
CT: control target
= control target key end

     0   :  { %s586_s19 = smov 0   ;;  %s738_s0 = inlined_call_operand.vmem [shape: f32[1,59,2,32,72], index: 0, kind: input, shape index: {}]   ;;  %s739_s1 = inlined_call_operand.vmem [shape: f32[5,5,72], index: 1, kind: input, shape index: {}]   ;;  %s740_s2 = inlined_call_operand.vmem [shape: f32[1,28,28,72], index: 2, kind: output, shape index: {}]  }
   0x1   :  { %v564_v0 = vld [vmem:[%s739_s1] sm:$0x1f]  ;;  %v569_v1 = vld [vmem:[%s739_s1 + $0x8] sm:$0x1f]  ;;  %v574_v2 = vld [vmem:[%s739_s1 + $0x10] sm:$0x1f] }
   0x2   :  { %v579_v3 = vld [vmem:[%s739_s1 + $0x18] sm:$0x1f]  ;;  %v584_v4 = vld [vmem:[%s739_s1 + $0x20] sm:$0x1f] }
   0x3 LB: > { %v37_v5 = vlaneseq  ;;  %s520_s20 = sshll.u32 %s544_s19, 7  ;;  %vm407_vm2 = vcmask 588800   ;;  %vm411_vm3 = vcmask 584704   ;;  %s519_s1 = sshll.u32 %s544_s19, 5  ;;  %s544_s19 = sphi %s586_s19, %s22_s19  }
   0x4   : > { %s597_s23 = scalar_lea.vmem %s738_s0, %s520_s20  ;;  %s406_s26 = scalar_lea.vmem %s740_s2, %s519_s1 }
   0x5   : > { %v592_v6 = vshrl.u32 %v37_v5, 7  ;;  %v27_v12 = vld [vmem:[%s597_s23] sm:$0xff]  ;;  %v616_v13 = vld [vmem:[%s597_s23 + $0x8] sm:$0xff]  ;;  %v29_v17 = vld [vmem:[%s597_s23 + $0x10] sm:$0xff]  ;;  %s22_s19 = sadd.s32 1, %s544_s19  }
   0x6   : > { %v30_v18 = vld [vmem:[%s597_s23 + $0x18] sm:$0xff]  ;;  %v467_v19 = vld [vmem:[%s597_s23 + $0x20] sm:$0xff]  ;;  %v468_v22 = vld [vmem:[%s597_s23 + $0x28] sm:$0xff]  ;;  %p19_p0 = scmp.ge.s32.totalorder %s22_s19, 28  }
   0x7   : > { %v600_v7 = vsub.s32 0, %v592_v6  ;;  %v603_v8 = vsub.s32 1, %v592_v6  ;;  %v606_v9 = vsub.s32 2, %v592_v6  ;;  %v609_v10 = vsub.s32 3, %v592_v6  ;;  %v469_v23 = vld [vmem:[%s597_s23 + $0x30] sm:$0xff]  ;;  %v470_v24 = vld [vmem:[%s597_s23 + $0x38] sm:$0xff] }
   0x8   : > { %v612_v11 = vsub.s32 4, %v592_v6  ;;  %v473_v49 = vld [vmem:[%s597_s23 + $0x40] sm:$0xff]  ;;  %v474_v50 = vld [vmem:[%s597_s23 + $0x48] sm:$0xff]  ;;  %v475_v55 = vld [vmem:[%s597_s23 + $0x50] sm:$0xff]  ;;  %vm383_vm0 = vcmp.lt.s32.totalorder %v592_v6, 7  ;;  %vm396_vm1 = vcmp.lt.s32.totalorder %v592_v6, 6 }
   0x9   : > { %v40_v14 = vrot.slane %v564_v0, %v600_v7  ;;  %v48_v15 = vrot.slane %v564_v0, %v603_v8  ;;  %v60_v16 = vrot.slane %v564_v0, %v606_v9  ;;  %v68_v20 = vrot.slane %v564_v0, %v609_v10  ;;  %v476_v56 = vld [vmem:[%s597_s23 + $0x58] sm:$0xff]  ;;  %v479_v57 = vld [vmem:[%s597_s23 + $0x60] sm:$0xff]  ;;  %v480_v58 = vld [vmem:[%s597_s23 + $0x68] sm:$0xff] }
   0xa   : > { %v80_v21 = vrot.slane %v564_v0, %v612_v11  ;;  %v101_v38 = vrot.slane %v569_v1, %v600_v7  ;;  %v113_v39 = vrot.slane %v569_v1, %v603_v8  ;;  %v125_v40 = vrot.slane %v569_v1, %v606_v9  ;;  %v481_v59 = vld [vmem:[%s597_s23 + $0x70] sm:$0xff]  ;;  %v482_v60 = vld [vmem:[%s597_s23 + $0x78] sm:$0xff] }
   0xb   : > { %v41_v25 = vmul.f32 %v40_v14, %v27_v12  ;;  %v42_v26 = vmul.f32 %v40_v14, %v616_v13  ;;  %v43_v27 = vmul.f32 %v40_v14, %v29_v17  ;;  %v44_v28 = vmul.f32 %v40_v14, %v30_v18 }
   0xc   : > { %v49_v29 = vmul.f32 %v467_v19, %v48_v15  ;;  %v50_v30 = vmul.f32 %v468_v22, %v48_v15  ;;  %v51_v31 = vmul.f32 %v469_v23, %v48_v15  ;;  %v52_v32 = vmul.f32 %v470_v24, %v48_v15 }
   0xd   : > { %v61_v33 = vmul.f32 %v60_v16, %v27_v12  ;;  %v62_v34 = vmul.f32 %v60_v16, %v616_v13  ;;  %v63_v35 = vmul.f32 %v60_v16, %v29_v17  ;;  %v64_v36 = vmul.f32 %v60_v16, %v30_v18 }
   0xe   : > { %v53_v37 = vadd.f32 %v49_v29, %v41_v25  ;;  %v69_v41 = vmul.f32 %v467_v19, %v68_v20  ;;  %v70_v42 = vmul.f32 %v468_v22, %v68_v20  ;;  %v71_v43 = vmul.f32 %v469_v23, %v68_v20 }
   0xf   : > { %v72_v44 = vmul.f32 %v470_v24, %v68_v20  ;;  %v54_v45 = vadd.f32 %v50_v30, %v42_v26  ;;  %v55_v46 = vadd.f32 %v51_v31, %v43_v27  ;;  %v56_v47 = vadd.f32 %v52_v32, %v44_v28 }
  0x10   : > { %v81_v48 = vmul.f32 %v80_v21, %v27_v12  ;;  %v73_v51 = vadd.f32 %v69_v41, %v61_v33  ;;  %v74_v52 = vadd.f32 %v70_v42, %v62_v34  ;;  %v75_v53 = vadd.f32 %v71_v43, %v63_v35 }
  0x11   : > { %v76_v54 = vadd.f32 %v72_v44, %v64_v36  ;;  %v102_v61 = vmul.f32 %v473_v49, %v101_v38  ;;  %v103_v62 = vmul.f32 %v474_v50, %v101_v38  ;;  %v104_v63 = vmul.f32 %v475_v55, %v101_v38 }
  0x12   : > { %v105_v5 = vmul.f32 %v476_v56, %v101_v38  ;;  %v114_v14 = vmul.f32 %v479_v57, %v113_v39  ;;  %v115_v15 = vmul.f32 %v480_v58, %v113_v39  ;;  %v116_v16 = vmul.f32 %v481_v59, %v113_v39 }
  0x13   : > { %v117_v12 = vmul.f32 %v482_v60, %v113_v39  ;;  %v106_v19 = vadd.f32 %v102_v61, %v53_v37  ;;  %v107_v20 = vadd.f32 %v103_v62, %v54_v45  ;;  %v108_v22 = vadd.f32 %v104_v63, %v55_v46  ;;  %v491_v61 = vld [vmem:[%s597_s23 + $0xa0] sm:$0xff] }
  0x14   : > { %v109_v23 = vadd.f32 %v105_v5, %v56_v47  ;;  %v126_v24 = vmul.f32 %v473_v49, %v125_v40  ;;  %v127_v25 = vmul.f32 %v474_v50, %v125_v40  ;;  %v128_v26 = vmul.f32 %v475_v55, %v125_v40 }
  0x15   : > { %v129_v27 = vmul.f32 %v476_v56, %v125_v40  ;;  %v82_v28 = vmul.f32 %v80_v21, %v616_v13  ;;  %v83_v29 = vmul.f32 %v80_v21, %v29_v17  ;;  %v84_v30 = vmul.f32 %v80_v21, %v30_v18 }
  0x16   : > { %v118_v31 = vadd.f32 %v114_v14, %v106_v19  ;;  %v119_v32 = vadd.f32 %v115_v15, %v107_v20  ;;  %v120_v33 = vadd.f32 %v116_v16, %v108_v22  ;;  %v121_v34 = vadd.f32 %v117_v12, %v109_v23  ;;  %v492_v19 = vld [vmem:[%s597_s23 + $0xa8] sm:$0xff]  ;;  %v493_v20 = vld [vmem:[%s597_s23 + $0xb0] sm:$0xff] }
  0x17   : > { %v130_v35 = vadd.f32 %v126_v24, %v73_v51  ;;  %v131_v36 = vadd.f32 %v127_v25, %v74_v52  ;;  %v132_v38 = vadd.f32 %v128_v26, %v75_v53  ;;  %v137_v37 = vrot.slane %v569_v1, %v609_v10  ;;  %v485_v52 = vld [vmem:[%s597_s23 + $0x80] sm:$0xff] }
  0x18   : > { %v149_v39 = vrot.slane %v569_v1, %v612_v11  ;;  %v133_v41 = vadd.f32 %v129_v27, %v76_v54  ;;  %v174_v13 = vrot.slane %v574_v2, %v600_v7  ;;  %v186_v17 = vrot.slane %v574_v2, %v603_v8 }
  0x19   : > { %v198_v18 = vrot.slane %v574_v2, %v606_v9  ;;  %v138_v21 = vmul.f32 %v479_v57, %v137_v37  ;;  %v139_v40 = vmul.f32 %v480_v58, %v137_v37  ;;  %v140_v42 = vmul.f32 %v481_v59, %v137_v37 }
  0x1a   : > { %v141_v43 = vmul.f32 %v482_v60, %v137_v37  ;;  %v150_v44 = vmul.f32 %v473_v49, %v149_v39  ;;  %v151_v45 = vmul.f32 %v474_v50, %v149_v39  ;;  %v152_v46 = vmul.f32 %v475_v55, %v149_v39  ;;  %v486_v50 = vld [vmem:[%s597_s23 + $0x88] sm:$0xff]  ;;  %v487_v55 = vld [vmem:[%s597_s23 + $0x90] sm:$0xff] }
  0x1b   : > { %v153_v47 = vmul.f32 %v476_v56, %v149_v39  ;;  %v142_v51 = vadd.f32 %v138_v21, %v130_v35  ;;  %v210_v53 = vrot.slane %v574_v2, %v609_v10  ;;  %v222_v54 = vrot.slane %v574_v2, %v612_v11  ;;  %v488_v56 = vld [vmem:[%s597_s23 + $0x98] sm:$0xff] }
  0x1c   : > { %v247_v57 = vrot.slane %v579_v3, %v600_v7  ;;  %v143_v58 = vadd.f32 %v139_v40, %v131_v36  ;;  %v144_v59 = vadd.f32 %v140_v42, %v132_v38  ;;  %v145_v49 = vadd.f32 %v141_v43, %v133_v41 }
  0x1d   : > { %v154_v60 = vadd.f32 %v150_v44, %v81_v48  ;;  %v175_v62 = vmul.f32 %v485_v52, %v174_v13  ;;  %v176_v63 = vmul.f32 %v486_v50, %v174_v13  ;;  %v177_v5 = vmul.f32 %v487_v55, %v174_v13  ;;  %v494_v48 = vld [vmem:[%s597_s23 + $0xb8] sm:$0xff] }
  0x1e   : > { %v178_v14 = vmul.f32 %v488_v56, %v174_v13  ;;  %v155_v15 = vadd.f32 %v151_v45, %v82_v28  ;;  %v156_v16 = vadd.f32 %v152_v46, %v83_v29  ;;  %v157_v12 = vadd.f32 %v153_v47, %v84_v30  ;;  %v497_v47 = vld [vmem:[%s597_s23 + $0xc0] sm:$0xff] }
  0x1f   : > { %v187_v22 = vmul.f32 %v491_v61, %v186_v17  ;;  %v179_v23 = vadd.f32 %v175_v62, %v118_v31  ;;  %v180_v24 = vadd.f32 %v176_v63, %v119_v32  ;;  %v188_v25 = vmul.f32 %v492_v19, %v186_v17  ;;  %v499_v62 = vld [vmem:[%s597_s23 + $0xd0] sm:$0xff]  ;;  %v500_v63 = vld [vmem:[%s597_s23 + $0xd8] sm:$0xff] }
  0x20   : > { %v189_v26 = vmul.f32 %v493_v20, %v186_v17  ;;  %v199_v27 = vmul.f32 %v485_v52, %v198_v18  ;;  %v200_v35 = vmul.f32 %v486_v50, %v198_v18  ;;  %v201_v36 = vmul.f32 %v487_v55, %v198_v18 }
  0x21   : > { %v202_v38 = vmul.f32 %v488_v56, %v198_v18  ;;  %v181_v37 = vadd.f32 %v177_v5, %v120_v33  ;;  %v182_v39 = vadd.f32 %v178_v14, %v121_v34  ;;  %v190_v41 = vmul.f32 %v494_v48, %v186_v17 }
  0x22   : > { %v191_v21 = vadd.f32 %v187_v22, %v179_v23  ;;  %v203_v13 = vadd.f32 %v199_v27, %v142_v51  ;;  %v204_v28 = vadd.f32 %v200_v35, %v143_v58  ;;  %v205_v29 = vadd.f32 %v201_v36, %v144_v59 }
  0x23   : > { %v206_v30 = vadd.f32 %v202_v38, %v145_v49  ;;  %v211_v40 = vmul.f32 %v491_v61, %v210_v53  ;;  %v212_v42 = vmul.f32 %v492_v19, %v210_v53  ;;  %v213_v31 = vmul.f32 %v493_v20, %v210_v53  ;;  %v498_v61 = vld [vmem:[%s597_s23 + $0xc8] sm:$0xff] }
  0x24   : > { %v214_v32 = vmul.f32 %v494_v48, %v210_v53  ;;  %v192_v43 = vadd.f32 %v188_v25, %v180_v24  ;;  %v223_v44 = vmul.f32 %v485_v52, %v222_v54  ;;  %v224_v45 = vmul.f32 %v486_v50, %v222_v54  ;;  %v506_v48 = vld [vmem:[%s597_s23 + $0xf8] sm:$0xff] }
  0x25   : > { %v225_v18 = vmul.f32 %v487_v55, %v222_v54  ;;  %v193_v33 = vadd.f32 %v189_v26, %v181_v37  ;;  %v194_v34 = vadd.f32 %v190_v41, %v182_v39  ;;  %v215_v17 = vadd.f32 %v211_v40, %v203_v13  ;;  %v505_v26 = vld [vmem:[%s597_s23 + $0xf0] sm:$0xff] }
  0x26   : > { %v226_v46 = vmul.f32 %v488_v56, %v222_v54  ;;  %v216_v51 = vadd.f32 %v212_v42, %v204_v28  ;;  %v217_v58 = vadd.f32 %v213_v31, %v205_v29  ;;  %v218_v59 = vadd.f32 %v214_v32, %v206_v30 }
  0x27   : > { %v227_v49 = vadd.f32 %v223_v44, %v154_v60  ;;  %v248_v5 = vmul.f32 %v497_v47, %v247_v57  ;;  %v249_v53 = vmul.f32 %v498_v61, %v247_v57  ;;  %v250_v14 = vmul.f32 %v499_v62, %v247_v57  ;;  %v503_v60 = vld [vmem:[%s597_s23 + $0xe0] sm:$0xff] }
  0x28   : > { %v251_v52 = vmul.f32 %v500_v63, %v247_v57  ;;  %v228_v50 = vadd.f32 %v224_v45, %v155_v15  ;;  %v229_v55 = vadd.f32 %v225_v18, %v156_v16  ;;  %v259_v54 = vrot.slane %v579_v3, %v603_v8  ;;  %v504_v16 = vld [vmem:[%s597_s23 + $0xe8] sm:$0xff] }
  0x29   : > { %v271_v56 = vrot.slane %v579_v3, %v606_v9  ;;  %v230_v19 = vadd.f32 %v226_v46, %v157_v12  ;;  %v252_v20 = vadd.f32 %v248_v5, %v191_v21  ;;  %v283_v22 = vrot.slane %v579_v3, %v609_v10 }
  0x2a   : > { %v295_v23 = vrot.slane %v579_v3, %v612_v11  ;;  %v253_v24 = vadd.f32 %v249_v53, %v192_v43  ;;  %v254_v57 = vadd.f32 %v250_v14, %v193_v33  ;;  %v255_v25 = vadd.f32 %v251_v52, %v194_v34  ;;  %v511_v52 = vld [vmem:[%s597_s23 + $0x110] sm:$0xff] }
  0x2b   : > { %v260_v15 = vmul.f32 %v503_v60, %v259_v54  ;;  %v272_v27 = vmul.f32 %v497_v47, %v271_v56  ;;  %v273_v35 = vmul.f32 %v498_v61, %v271_v56  ;;  %v274_v36 = vmul.f32 %v499_v62, %v271_v56 }
  0x2c   : > { %v275_v38 = vmul.f32 %v500_v63, %v271_v56  ;;  %v261_v12 = vmul.f32 %v504_v16, %v259_v54  ;;  %v262_v37 = vmul.f32 %v505_v26, %v259_v54  ;;  %v263_v39 = vmul.f32 %v506_v48, %v259_v54  ;;  %v512_v54 = vld [vmem:[%s597_s23 + $0x118] sm:$0xff]  ;;  %v515_v56 = vld [vmem:[%s597_s23 + $0x120] sm:$0xff] }
  0x2d   : > { %v264_v41 = vadd.f32 %v260_v15, %v252_v20  ;;  %v276_v21 = vadd.f32 %v272_v27, %v215_v17  ;;  %v277_v13 = vadd.f32 %v273_v35, %v216_v51  ;;  %v278_v28 = vadd.f32 %v274_v36, %v217_v58  ;;  %v517_v20 = vld [vmem:[%s597_s23 + $0x130] sm:$0xff] }
  0x2e   : > { %v279_v29 = vadd.f32 %v275_v38, %v218_v59  ;;  %v284_v30 = vmul.f32 %v503_v60, %v283_v22  ;;  %v285_v40 = vmul.f32 %v504_v16, %v283_v22  ;;  %v286_v42 = vmul.f32 %v505_v26, %v283_v22 }
  0x2f   : > { %v287_v31 = vmul.f32 %v506_v48, %v283_v22  ;;  %v296_v32 = vmul.f32 %v497_v47, %v295_v23  ;;  %v297_v43 = vmul.f32 %v498_v61, %v295_v23  ;;  %v298_v44 = vmul.f32 %v499_v62, %v295_v23  ;;  %v509_v47 = vld [vmem:[%s597_s23 + $0x100] sm:$0xff]  ;;  %v510_v61 = vld [vmem:[%s597_s23 + $0x108] sm:$0xff]  ;;  %v518_v22 = vld [vmem:[%s597_s23 + $0x138] sm:$0xff] }
  0x30   : > { %v299_v45 = vmul.f32 %v500_v63, %v295_v23  ;;  %v265_v18 = vadd.f32 %v261_v12, %v253_v24  ;;  %v266_v33 = vadd.f32 %v262_v37, %v254_v57  ;;  %v267_v34 = vadd.f32 %v263_v39, %v255_v25 }
  0x31   : > { %v288_v17 = vadd.f32 %v284_v30, %v276_v21  ;;  %v289_v46 = vadd.f32 %v285_v40, %v277_v13  ;;  %v290_v51 = vadd.f32 %v286_v42, %v278_v28  ;;  %v291_v58 = vadd.f32 %v287_v31, %v279_v29 }
  0x32   : > { %v300_v59 = vadd.f32 %v296_v32, %v227_v49  ;;  %v301_v5 = vadd.f32 %v297_v43, %v228_v50  ;;  %v302_v53 = vadd.f32 %v298_v44, %v229_v55  ;;  %v320_v62 = vrot.slane %v584_v4, %v600_v7  ;;  %v516_v55 = vld [vmem:[%s597_s23 + $0x128] sm:$0xff] }
  0x33   : > { %v332_v63 = vrot.slane %v584_v4, %v603_v8  ;;  %v303_v14 = vadd.f32 %v299_v45, %v230_v19  ;;  %v344_v60 = vrot.slane %v584_v4, %v606_v9  ;;  %v356_v49 = vrot.slane %v584_v4, %v609_v10 }
  0x34   : > { %v368_v50 = vrot.slane %v584_v4, %v612_v11  ;;  %v321_v7 = vmul.f32 %v509_v47, %v320_v62  ;;  %v322_v23 = vmul.f32 %v510_v61, %v320_v62  ;;  %v323_v24 = vmul.f32 %v511_v52, %v320_v62 }
  0x35   : > { %v324_v8 = vmul.f32 %v512_v54, %v320_v62  ;;  %v333_v19 = vmul.f32 %v515_v56, %v332_v63  ;;  %v334_v57 = vmul.f32 %v516_v55, %v332_v63  ;;  %v335_v25 = vmul.f32 %v517_v20, %v332_v63 }
  0x36   : > { %v336_v15 = vmul.f32 %v518_v22, %v332_v63  ;;  %v325_v9 = vadd.f32 %v321_v7, %v264_v41  ;;  %v326_v16 = vadd.f32 %v322_v23, %v265_v18  ;;  %v327_v26 = vadd.f32 %v323_v24, %v266_v33 }
  0x37   : > { %v328_v10 = vadd.f32 %v324_v8, %v267_v34  ;;  %v345_v48 = vmul.f32 %v509_v47, %v344_v60  ;;  %v346_v27 = vmul.f32 %v510_v61, %v344_v60  ;;  %v347_v11 = vmul.f32 %v511_v52, %v344_v60 }
  0x38   : > { %v348_v35 = vmul.f32 %v512_v54, %v344_v60  ;;  %v337_v36 = vadd.f32 %v333_v19, %v325_v9  ;;  %v338_v38 = vadd.f32 %v334_v57, %v326_v16  ;;  %v339_v12 = vadd.f32 %v335_v25, %v327_v26 }
  0x39   : > { %v340_v37 = vadd.f32 %v336_v15, %v328_v10  ;;  %v349_v39 = vadd.f32 %v345_v48, %v288_v17  ;;  %v350_v21 = vadd.f32 %v346_v27, %v289_v46  ;;  %v351_v13 = vadd.f32 %v347_v11, %v290_v51 }
  0x3a   : > { %v352_v28 = vadd.f32 %v348_v35, %v291_v58  ;;  %v357_v29 = vmul.f32 %v515_v56, %v356_v49  ;;  %v358_v30 = vmul.f32 %v516_v55, %v356_v49  ;;  %v359_v41 = vmul.f32 %v517_v20, %v356_v49 }
  0x3b   : > { %v360_v40 = vmul.f32 %v518_v22, %v356_v49  ;;  %v369_v42 = vmul.f32 %v509_v47, %v368_v50  ;;  %v370_v31 = vmul.f32 %v510_v61, %v368_v50  ;;  %v371_v32 = vmul.f32 %v511_v52, %v368_v50 }
  0x3c   : > { %v372_v43 = vmul.f32 %v512_v54, %v368_v50  ;;  %v361_v44 = vadd.f32 %v357_v29, %v349_v39  ;;  %v362_v45 = vadd.f32 %v358_v30, %v350_v21  ;;  %v363_v18 = vadd.f32 %v359_v41, %v351_v13 }
  0x3d   : > { %v364_v33 = vadd.f32 %v360_v40, %v352_v28  ;;  %v373_v34 = vadd.f32 %v369_v42, %v300_v59  ;;  %v374_v17 = vadd.f32 %v370_v31, %v301_v5  ;;  %v375_v46 = vadd.f32 %v371_v32, %v302_v53 }
  0x3e   : > { %v376_v51 = vadd.f32 %v372_v43, %v303_v14  ;;  %v377_v58 = vrot.slane %v361_v44, 1  ;;  %v378_v62 = vrot.slane %v362_v45, 1  ;;  %v379_v63 = vrot.slane %v363_v18, 1 }
  0x3f   : > { %v380_v56 = vrot.slane %v364_v33, 1  ;;  %v392_v60 = vrot.slane %v373_v34, 2  ;;  %v393_v49 = vrot.slane %v374_v17, 2  ;;  %v394_v55 = vrot.slane %v375_v46, 2 }
  0x40   : > { %v395_v47 = vrot.slane %v376_v51, 2  ;;  %v385_v52 = vsel %vm383_vm0, %v378_v62, %v379_v63  ;;  %v386_v59 = vsel %vm383_vm0, %v377_v58, %v378_v62 }
  0x41   : > { %v384_v61 = vsel %vm383_vm0, %v379_v63, %v380_v56  ;;  %v387_v5 = vsel %vm383_vm0, %v380_v56, %v377_v58  ;;  %v388_v53 = vadd.f32 %v386_v59, %v337_v36  ;;  %v389_v14 = vadd.f32 %v385_v52, %v338_v38  ;;  %21 = sbr.rel (!%p19_p0) target bundleno = 3 (0x3), region = 46 }
  0x42   : > { %v390_v54 = vadd.f32 %v384_v61, %v339_v12  ;;  %v391_v50 = vadd.f32 %v387_v5, %v340_v37  ;;  %v397_v20 = vsel %vm396_vm1, %v394_v55, %v395_v47  ;;  %v398_v22 = vsel %vm396_vm1, %v393_v49, %v394_v55 }
  0x43   : > { %v399_v7 = vsel %vm396_vm1, %v392_v60, %v393_v49  ;;  %v400_v23 = vsel %vm396_vm1, %v395_v47, %v392_v60  ;;  %v402_v8 = vadd.f32 %v398_v22, %v389_v14 }
  0x44   : > { %v401_v24 = vadd.f32 %v399_v7, %v388_v53  ;;  %v403_v19 = vadd.f32 %v397_v20, %v390_v54  ;;  %v404_v57 = vadd.f32 %v400_v23, %v391_v50 }
  0x45   : > { %409 = vst.msk [vmem:[%s406_s26 + $0x8] sm:$0xff] %vm407_vm2, %v402_v8 }
  0x46   : > { %408 = vst.msk [vmem:[%s406_s26] sm:$0xff] %vm407_vm2, %v401_v24  ;;  %410 = vst.msk [vmem:[%s406_s26 + $0x10] sm:$0xff] %vm407_vm2, %v403_v19 }
  0x47   : > { %412 = vst.msk [vmem:[%s406_s26 + $0x18] sm:$0xf] %vm411_vm3, %v404_v57 }

</bundles_post_ra>
